<compile_context>
chip_gen: v7x
topology: tpu7x:2x2x1
jax: 0.10.0
libtpu: 0.0.40
codegen_flags: <defaults>
</compile_context>

<pallas_src>
import math

import jax
import jax.numpy as jnp
from jax.experimental import pallas as pl
from jax.experimental.pallas import tpu as pltpu


def _round_up(x, m):
    return ((x + m - 1) // m) * m


def _cdiv(a, b):
    return -(-a // b)


# --------------------------------------------------------------------------- #
# Kernel: 4 bf16 matmuls (f32 accumulate) + 3 relus.  Dueling combine is
# folded into w4/b4, so there is no in-kernel reduction or masking.
# --------------------------------------------------------------------------- #
def dqn_duel_kernel(x_ref,
                    w1_ref, b1_ref,
                    w2_ref, b2_ref,
                    w3_ref, b3_ref,
                    w4_ref, b4_ref,
                    out_ref):
    # astype is a no-op if the caller already supplies bf16 activations.
    x = x_ref[...].astype(jnp.bfloat16)

    h1 = jnp.dot(x, w1_ref[...], preferred_element_type=jnp.float32) + b1_ref[...]
    h1 = jnp.maximum(h1, 0.0)

    h2 = jnp.dot(h1.astype(jnp.bfloat16), w2_ref[...],
                 preferred_element_type=jnp.float32) + b2_ref[...]
    h2 = jnp.maximum(h2, 0.0)

    # Fused adv|val hidden layer: one [64,128] matmul instead of two [64,64].
    h3 = jnp.dot(h2.astype(jnp.bfloat16), w3_ref[...],
                 preferred_element_type=jnp.float32) + b3_ref[...]
    h3 = jnp.maximum(h3, 0.0)

    # Fused head with the dueling combine baked into w4/b4.
    # Columns >= num_actions are exactly zero (zero weight & bias columns).
    q = jnp.dot(h3.astype(jnp.bfloat16), w4_ref[...],
                preferred_element_type=jnp.float32) + b4_ref[...]

    out_ref[...] = q.astype(out_ref.dtype)


# --------------------------------------------------------------------------- #
# Param prep: fuse adv/val heads, fold dueling combine into the head matrix,
# pad head output to a multiple of 8 lanes, cast weights to bf16.
# --------------------------------------------------------------------------- #
def prepare_params(p, num_actions):
    half = p["w3a"].shape[0]          # 64
    A = num_actions
    out_w = _round_up(A, 8)           # narrow output slab (8 for A<=8)

    w3 = jnp.concatenate([p["w3a"], p["w3v"]], axis=1)   # [64, 128]
    b3 = jnp.concatenate([p["b3a"], p["b3v"]], axis=1)   # [1, 128]

    # Fold  out_j = adv_j - mean_k(adv_k) + val  into the head weights (f32,
    # then cast once to bf16).  Padded columns stay exactly zero.
    w4a_c = p["w4a"] - jnp.mean(p["w4a"], axis=1, keepdims=True)   # [64, A]
    b4a_c = p["b4a"] - jnp.mean(p["b4a"], axis=1, keepdims=True)   # [1, A]

    w4 = jnp.zeros((2 * half, out_w), jnp.float32)
    w4 = w4.at[:half, :A].set(w4a_c)
    w4 = w4.at[half:, :A].set(jnp.broadcast_to(p["w4v"], (half, A)))
    b4 = jnp.zeros((1, out_w), jnp.float32)
    b4 = b4.at[:, :A].set(b4a_c + p["b4v"][0, 0])

    bf16 = lambda a: a.astype(jnp.bfloat16)
    return dict(
        w1=bf16(p["w1"]), b1=p["b1"],
        w2=bf16(p["w2"]), b2=p["b2"],
        w3=bf16(w3), b3=b3,
        w4=bf16(w4), b4=b4,
    )


# --------------------------------------------------------------------------- #
# Batch tiling: big tiles to amortize per-step overhead, >=2 tiles with an
# even grid count when possible (keeps both v7x TensorCores busy), tb a
# multiple of 8, and power-of-two batches divide evenly (no pad copy).
# --------------------------------------------------------------------------- #
def _choose_tiling(batch, block_batch):
    b8 = _round_up(batch, 8)
    tb_max = max(8, _round_up(block_batch, 8))
    if b8 <= 8:
        return b8, b8, 1
    n = max(2, _cdiv(b8, tb_max))
    if n % 2:
        n += 1
    tb = _round_up(_cdiv(b8, n), 8)
    return tb, n * tb, n


# --------------------------------------------------------------------------- #
# Wrapper
# --------------------------------------------------------------------------- #
def dqn_forward(x, prep, num_actions, *, block_batch=2048,
                out_dtype=jnp.bfloat16):
    """x: [B, total_states] (f32 or bf16); prep: prepare_params(...) output."""
    B, S = x.shape
    out_w = prep["w4"].shape[1]

    tb, b_pad, grid_n = _choose_tiling(B, block_batch)
    if b_pad != B:
        # TODO(synk): could mask the ragged last tile in-kernel instead of
        # materializing a padded copy; pad is tiny (< tb rows) and rare.
        x = jnp.pad(x, ((0, b_pad - B), (0, 0)))

    operands = (x,
                prep["w1"], prep["b1"],
                prep["w2"], prep["b2"],
                prep["w3"], prep["b3"],
                prep["w4"], prep["b4"])

    # Weights/biases stay pinned in VMEM across grid steps (constant index).
    in_specs = [pl.BlockSpec((tb, S), lambda i: (i, 0))]
    in_specs += [pl.BlockSpec(op.shape, lambda i: (0, 0)) for op in operands[1:]]

    d1 = prep["w1"].shape[1]          # 128
    d2 = prep["w2"].shape[1]          # 64
    d3 = prep["w3"].shape[1]          # 128
    flops = 2 * b_pad * (S * d1 + d1 * d2 + d2 * d3 + d3 * out_w)
    bytes_accessed = (x.size * x.dtype.itemsize
                      + sum(int(op.size) * op.dtype.itemsize
                            for op in operands[1:])
                      + b_pad * out_w * jnp.dtype(out_dtype).itemsize)

    out = pl.pallas_call(
        dqn_duel_kernel,
        out_shape=jax.ShapeDtypeStruct((b_pad, out_w), out_dtype),
        grid=(grid_n,),
        in_specs=in_specs,
        out_specs=pl.BlockSpec((tb, out_w), lambda i: (i, 0)),
        compiler_params=pltpu.CompilerParams(
            dimension_semantics=("parallel",)),
        cost_estimate=pl.CostEstimate(
            flops=flops, transcendentals=0, bytes_accessed=bytes_accessed),
    )(*operands)

    # Narrow slab -> this slice only touches B x out_w (8) bf16 values.
    return out[:B, :num_actions]


# --------------------------------------------------------------------------- #
# Init + references
# --------------------------------------------------------------------------- #
def init_params(key, total_states, total_actions, dim=128):
    """Mimics PyTorch Linear default init (uniform +-1/sqrt(fan_in)).
    Weights stored as [in, out] (transposed vs torch's [out, in])."""
    # TODO(synk): torch.manual_seed-identical parameter values are not
    # reproducible in JAX; initialization distribution is matched instead.
    half = dim // 2

    def linear(k, fan_in, fan_out):
        kw, kb = jax.random.split(k)
        bound = 1.0 / math.sqrt(fan_in)
        w = jax.random.uniform(kw, (fan_in, fan_out), jnp.float32, -bound, bound)
        b = jax.random.uniform(kb, (1, fan_out), jnp.float32, -bound, bound)
        return w, b

    keys = jax.random.split(key, 6)
    w1, b1 = linear(keys[0], total_states, dim)
    w2, b2 = linear(keys[1], dim, half)
    w3a, b3a = linear(keys[2], half, half)
    w3v, b3v = linear(keys[3], half, half)
    w4a, b4a = linear(keys[4], half, total_actions)
    w4v, b4v = linear(keys[5], half, 1)
    return dict(w1=w1, b1=b1, w2=w2, b2=b2,
                w3a=w3a, b3a=b3a, w3v=w3v, b3v=b3v,
                w4a=w4a, b4a=b4a, w4v=w4v, b4v=b4v)


def dqn_reference_f32(x, p):
    """Pure f32 JAX reference (original module semantics)."""
    h1 = jax.nn.relu(x @ p["w1"] + p["b1"])
    h2 = jax.nn.relu(h1 @ p["w2"] + p["b2"])
    adv = jax.nn.relu(h2 @ p["w3a"] + p["b3a"])
    val = jax.nn.relu(h2 @ p["w3v"] + p["b3v"])
    adv = adv @ p["w4a"] + p["b4a"]
    val = val @ p["w4v"] + p["b4v"]
    return val + adv - jnp.mean(adv, axis=1, keepdims=True)


def dqn_reference_fused_bf16(x, prep, num_actions):
    """Reference mirroring the kernel exactly: fused/folded bf16 weights,
    bf16 matmul operands, f32 accumulate, combine folded into the head."""
    def mm(a, w):
        return jnp.dot(a.astype(jnp.bfloat16), w,
                       preferred_element_type=jnp.float32)
    h1 = jnp.maximum(mm(x, prep["w1"]) + prep["b1"], 0.0)
    h2 = jnp.maximum(mm(h1, prep["w2"]) + prep["b2"], 0.0)
    h3 = jnp.maximum(mm(h2, prep["w3"]) + prep["b3"], 0.0)
    q = mm(h3, prep["w4"]) + prep["b4"]
    return q[:, :num_actions]


# --------------------------------------------------------------------------- #
if __name__ == "__main__":
    total_states = 32
    total_actions = 4
    batch = 16

    key = jax.random.PRNGKey(0)
    kx, kp = jax.random.split(key)
    x = jax.random.normal(kx, (batch, total_states), jnp.float32)
    params = init_params(kp, total_states, total_actions)
    prep = prepare_params(params, total_actions)

    # Default block_batch=2048; the tiling logic still forces a 2-step grid
    # (tb=8) at this demo size so the batch pipeline is exercised.
    out = dqn_forward(x, prep, total_actions)
    out = jax.block_until_ready(out)
    assert out.shape == (batch, total_actions)
    out_f32 = out.astype(jnp.float32)

    # Tight check vs a reference using the identical fused/bf16 scheme
    # (quantized to the same bf16 output dtype).
    ref_fused = dqn_reference_fused_bf16(x, prep, total_actions)
    ref_fused_q = ref_fused.astype(jnp.bfloat16).astype(jnp.float32)
    assert jnp.allclose(out_f32, ref_fused_q, atol=1e-2, rtol=1e-2), \
        "mismatch vs fused bf16 reference"

    # Loose check vs full-f32 module semantics (bf16 quantization tolerance).
    ref_f32 = dqn_reference_f32(x, params)
    assert jnp.allclose(out_f32, ref_f32, atol=3e-2, rtol=3e-2), \
        "mismatch vs f32 reference"

    print("KERNEL_OK")
</pallas_src>

<mosaic_0001>
module attributes {stable_mosaic.version = 11 : i64} {
  func.func @dqn_duel_kernel(%arg0: i32, %arg1: memref<8x32xf32, #tpu.memory_space<vmem>>, %arg2: memref<32x128xbf16, #tpu.memory_space<vmem>>, %arg3: memref<1x128xf32, #tpu.memory_space<vmem>>, %arg4: memref<128x64xbf16, #tpu.memory_space<vmem>>, %arg5: memref<1x64xf32, #tpu.memory_space<vmem>>, %arg6: memref<64x128xbf16, #tpu.memory_space<vmem>>, %arg7: memref<1x128xf32, #tpu.memory_space<vmem>>, %arg8: memref<128x8xbf16, #tpu.memory_space<vmem>>, %arg9: memref<1x8xf32, #tpu.memory_space<vmem>>, %arg10: memref<8x8xbf16, #tpu.memory_space<vmem>>) attributes {dimension_semantics = [#tpu.dimension_semantics<parallel>], iteration_bounds = array<i64: 2>, scalar_prefetch = 0 : i64, scratch_operands = 0 : i64, tpu.core_type = #tpu.core_type<tc>, window_params = [{transform_indices = @transform_0, window_bounds = array<i64: 8, 32>}, {pipeline_mode = #tpu.pipeline_mode<synchronous>, transform_indices = @transform_1, window_bounds = array<i64: 32, 128>}, {pipeline_mode = #tpu.pipeline_mode<synchronous>, transform_indices = @transform_2, window_bounds = array<i64: 1, 128>}, {pipeline_mode = #tpu.pipeline_mode<synchronous>, transform_indices = @transform_3, window_bounds = array<i64: 128, 64>}, {pipeline_mode = #tpu.pipeline_mode<synchronous>, transform_indices = @transform_4, window_bounds = array<i64: 1, 64>}, {pipeline_mode = #tpu.pipeline_mode<synchronous>, transform_indices = @transform_5, window_bounds = array<i64: 64, 128>}, {pipeline_mode = #tpu.pipeline_mode<synchronous>, transform_indices = @transform_6, window_bounds = array<i64: 1, 128>}, {pipeline_mode = #tpu.pipeline_mode<synchronous>, transform_indices = @transform_7, window_bounds = array<i64: 128, 8>}, {pipeline_mode = #tpu.pipeline_mode<synchronous>, transform_indices = @transform_8, window_bounds = array<i64: 1, 8>}, {transform_indices = @transform_9, window_bounds = array<i64: 8, 8>}]} {
    %c0 = arith.constant 0 : index
    %c0_0 = arith.constant 0 : index
    %0 = vector.load %arg1[%c0, %c0_0] : memref<8x32xf32, #tpu.memory_space<vmem>>, vector<8x32xf32>
    %1 = arith.truncf %0 : vector<8x32xf32> to vector<8x32xbf16>
    %c0_1 = arith.constant 0 : index
    %c0_2 = arith.constant 0 : index
    %2 = vector.load %arg2[%c0_1, %c0_2] : memref<32x128xbf16, #tpu.memory_space<vmem>>, vector<32x128xbf16>
    %cst = arith.constant dense<0.000000e+00> : vector<8x128xf32>
    %3 = tpu.matmul %1, %2, %cst {dimension_numbers = #tpu.dot_dimension_numbers<[1], [0], [0], [1], [0, 0, 1, 1], [], []>} : vector<8x32xbf16>, vector<32x128xbf16>, vector<8x128xf32> -> vector<8x128xf32>
    %c0_3 = arith.constant 0 : index
    %c0_4 = arith.constant 0 : index
    %4 = vector.load %arg3[%c0_3, %c0_4] : memref<1x128xf32, #tpu.memory_space<vmem>>, vector<1x128xf32>
    %5 = vector.broadcast %4 : vector<1x128xf32> to vector<8x128xf32>
    %6 = arith.addf %3, %5 : vector<8x128xf32>
    %cst_5 = arith.constant 0.000000e+00 : f32
    %7 = vector.broadcast %cst_5 : f32 to vector<8x128xf32>
    %8 = arith.maximumf %6, %7 : vector<8x128xf32>
    %9 = arith.truncf %8 : vector<8x128xf32> to vector<8x128xbf16>
    %c0_6 = arith.constant 0 : index
    %c0_7 = arith.constant 0 : index
    %10 = vector.load %arg4[%c0_6, %c0_7] : memref<128x64xbf16, #tpu.memory_space<vmem>>, vector<128x64xbf16>
    %cst_8 = arith.constant dense<0.000000e+00> : vector<8x64xf32>
    %11 = tpu.matmul %9, %10, %cst_8 {dimension_numbers = #tpu.dot_dimension_numbers<[1], [0], [0], [1], [0, 0, 1, 1], [], []>} : vector<8x128xbf16>, vector<128x64xbf16>, vector<8x64xf32> -> vector<8x64xf32>
    %c0_9 = arith.constant 0 : index
    %c0_10 = arith.constant 0 : index
    %12 = vector.load %arg5[%c0_9, %c0_10] : memref<1x64xf32, #tpu.memory_space<vmem>>, vector<1x64xf32>
    %13 = vector.broadcast %12 : vector<1x64xf32> to vector<8x64xf32>
    %14 = arith.addf %11, %13 : vector<8x64xf32>
    %cst_11 = arith.constant 0.000000e+00 : f32
    %15 = vector.broadcast %cst_11 : f32 to vector<8x64xf32>
    %16 = arith.maximumf %14, %15 : vector<8x64xf32>
    %17 = arith.truncf %16 : vector<8x64xf32> to vector<8x64xbf16>
    %c0_12 = arith.constant 0 : index
    %c0_13 = arith.constant 0 : index
    %18 = vector.load %arg6[%c0_12, %c0_13] : memref<64x128xbf16, #tpu.memory_space<vmem>>, vector<64x128xbf16>
    %cst_14 = arith.constant dense<0.000000e+00> : vector<8x128xf32>
    %19 = tpu.matmul %17, %18, %cst_14 {dimension_numbers = #tpu.dot_dimension_numbers<[1], [0], [0], [1], [0, 0, 1, 1], [], []>} : vector<8x64xbf16>, vector<64x128xbf16>, vector<8x128xf32> -> vector<8x128xf32>
    %c0_15 = arith.constant 0 : index
    %c0_16 = arith.constant 0 : index
    %20 = vector.load %arg7[%c0_15, %c0_16] : memref<1x128xf32, #tpu.memory_space<vmem>>, vector<1x128xf32>
    %21 = vector.broadcast %20 : vector<1x128xf32> to vector<8x128xf32>
    %22 = arith.addf %19, %21 : vector<8x128xf32>
    %cst_17 = arith.constant 0.000000e+00 : f32
    %23 = vector.broadcast %cst_17 : f32 to vector<8x128xf32>
    %24 = arith.maximumf %22, %23 : vector<8x128xf32>
    %25 = arith.truncf %24 : vector<8x128xf32> to vector<8x128xbf16>
    %c0_18 = arith.constant 0 : index
    %c0_19 = arith.constant 0 : index
    %26 = vector.load %arg8[%c0_18, %c0_19] : memref<128x8xbf16, #tpu.memory_space<vmem>>, vector<128x8xbf16>
    %cst_20 = arith.constant dense<0.000000e+00> : vector<8x8xf32>
    %27 = tpu.matmul %25, %26, %cst_20 {dimension_numbers = #tpu.dot_dimension_numbers<[1], [0], [0], [1], [0, 0, 1, 1], [], []>} : vector<8x128xbf16>, vector<128x8xbf16>, vector<8x8xf32> -> vector<8x8xf32>
    %c0_21 = arith.constant 0 : index
    %c0_22 = arith.constant 0 : index
    %28 = vector.load %arg9[%c0_21, %c0_22] : memref<1x8xf32, #tpu.memory_space<vmem>>, vector<1x8xf32>
    %29 = vector.broadcast %28 : vector<1x8xf32> to vector<8x8xf32>
    %30 = arith.addf %27, %29 : vector<8x8xf32>
    %31 = arith.truncf %30 : vector<8x8xf32> to vector<8x8xbf16>
    %c0_23 = arith.constant 0 : index
    %c0_24 = arith.constant 0 : index
    %32 = vector.load %arg10[%c0_23, %c0_24] : memref<8x8xbf16, #tpu.memory_space<vmem>>, vector<8x8xbf16>
    tpu.vector_store %arg10[%c0_23, %c0_24], %31 {strides = array<i32>} : memref<8x8xbf16, #tpu.memory_space<vmem>>, vector<8x8xbf16>,
    return
  }
  func.func @transform_0(%arg0: i32) -> (i32, i32) {
    %c0_i32 = arith.constant 0 : i32
    %c0_i32_0 = arith.constant 0 : i32
    return %arg0, %c0_i32 : i32, i32
  }
  func.func @transform_1(%arg0: i32) -> (i32, i32) {
    %c0_i32 = arith.constant 0 : i32
    %c0_i32_0 = arith.constant 0 : i32
    %c0_i32_1 = arith.constant 0 : i32
    return %c0_i32, %c0_i32_0 : i32, i32
  }
  func.func @transform_2(%arg0: i32) -> (i32, i32) {
    %c0_i32 = arith.constant 0 : i32
    %c0_i32_0 = arith.constant 0 : i32
    %c0_i32_1 = arith.constant 0 : i32
    return %c0_i32, %c0_i32_0 : i32, i32
  }
  func.func @transform_3(%arg0: i32) -> (i32, i32) {
    %c0_i32 = arith.constant 0 : i32
    %c0_i32_0 = arith.constant 0 : i32
    %c0_i32_1 = arith.constant 0 : i32
    return %c0_i32, %c0_i32_0 : i32, i32
  }
  func.func @transform_4(%arg0: i32) -> (i32, i32) {
    %c0_i32 = arith.constant 0 : i32
    %c0_i32_0 = arith.constant 0 : i32
    %c0_i32_1 = arith.constant 0 : i32
    return %c0_i32, %c0_i32_0 : i32, i32
  }
  func.func @transform_5(%arg0: i32) -> (i32, i32) {
    %c0_i32 = arith.constant 0 : i32
    %c0_i32_0 = arith.constant 0 : i32
    %c0_i32_1 = arith.constant 0 : i32
    return %c0_i32, %c0_i32_0 : i32, i32
  }
  func.func @transform_6(%arg0: i32) -> (i32, i32) {
    %c0_i32 = arith.constant 0 : i32
    %c0_i32_0 = arith.constant 0 : i32
    %c0_i32_1 = arith.constant 0 : i32
    return %c0_i32, %c0_i32_0 : i32, i32
  }
  func.func @transform_7(%arg0: i32) -> (i32, i32) {
    %c0_i32 = arith.constant 0 : i32
    %c0_i32_0 = arith.constant 0 : i32
    %c0_i32_1 = arith.constant 0 : i32
    return %c0_i32, %c0_i32_0 : i32, i32
  }
  func.func @transform_8(%arg0: i32) -> (i32, i32) {
    %c0_i32 = arith.constant 0 : i32
    %c0_i32_0 = arith.constant 0 : i32
    %c0_i32_1 = arith.constant 0 : i32
    return %c0_i32, %c0_i32_0 : i32, i32
  }
  func.func @transform_9(%arg0: i32) -> (i32, i32) {
    %c0_i32 = arith.constant 0 : i32
    %c0_i32_0 = arith.constant 0 : i32
    return %arg0, %c0_i32 : i32, i32
  }
}

</mosaic_0001>

<bundles_post_ra>
// kernel: tpu_custom_call.1
= control target key start
LH: loop header
LB: loop body
LE: loop exit
PB: predicated region body
PF: predicated region fallthrough
CT: control target
= control target key end

     0   :  { %s980_s30 = smov 0   ;;  %s1109_s0 = inlined_call_operand.vmem [shape: f32[16,32], index: 0, kind: input, shape index: {}]   ;;  %s1110_s1 = inlined_call_operand.vmem [shape: bf16[32,128], index: 1, kind: input, shape index: {}]   ;;  %s1111_s2 = inlined_call_operand.vmem [shape: f32[1,128], index: 2, kind: input, shape index: {}]   ;;  %s1112_s3 = inlined_call_operand.vmem [shape: bf16[128,64], index: 3, kind: input, shape index: {}]   ;;  %s1113_s4 = inlined_call_operand.vmem [shape: f32[1,64], index: 4, kind: input, shape index: {}]   ;;  %s1114_s5 = inlined_call_operand.vmem [shape: bf16[64,128], index: 5, kind: input, shape index: {}]   ;;  %s1115_s6 = inlined_call_operand.vmem [shape: f32[1,128], index: 6, kind: input, shape index: {}]   ;;  %s1116_s7 = inlined_call_operand.vmem [shape: bf16[128,8], index: 7, kind: input, shape index: {}]   ;;  %s1117_s8 = inlined_call_operand.vmem [shape: f32[1,8], index: 8, kind: input, shape index: {}]   ;;  %s1118_s9 = inlined_call_operand.vmem [shape: bf16[16,8], index: 9, kind: output, shape index: {}]  }
   0x1 LB: > { %s765_s10 = sadd.s32 4294967295, %s926_s30   ;;  %p769_p0 = scmp.ge.s32.totalorder %s926_s30, 1  ;;  %s926_s30 = sphi %s980_s30, %s19_s30  }
   0x2   : > { %p286_p1 = scmp.lt.s32.totalorder %s926_s30, 3 }
   0x4   : > { %p287_p2 = pnand %p769_p0, %p286_p1 }
   0x5   : > { %v898_v0 = vld [vmem:[%s1110_s1] sm:$0xff] (!%p287_p2)   ;;  %v928_v1 = vmov (!%p287_p2), 0.0   ;;  %v899_v2 = vld [vmem:[%s1110_s1 + $0x8] sm:$0xff] (!%p287_p2)   ;;  %vm929_vm0 = vmmov (!%p287_p2), 0   ;;  %p320_p3 = scmp.lt.s32.totalorder (!%p287_p2), %s765_s10, 1  ;;  %vm354_vm1 = vcmask (!%p287_p2), 261120  }
   0x6   : > { %290 = sbr.rel (%p287_p2) target bundleno = 890 (0x37a), region = 56  ;;  %828 = vmatprep.subr.bf16.mxu1 (!%p287_p2), %v928_v1  ;;  %856 = vmatprep.subr.bf16.mxu0 (!%p287_p2), %v928_v1  ;;  %v900_v4 = vld [vmem:[%s1112_s3] sm:$0xff] (!%p287_p2)   ;;  %v901_v6 = vld [vmem:[%s1112_s3 + $0x8] sm:$0xff] (!%p287_p2)   ;;  %v902_v7 = vld [vmem:[%s1112_s3 + $0x10] sm:$0xff] (!%p287_p2)   ;;  %vm552_vm2 = vcmask (!%p287_p2), 523264   ;;  %vm710_vm3 = vcmask (!%p287_p2), 60416  }
   0x7   : > { %829 = vmatpush3.bf16.msra.mxu1 (!%p287_p2), %v898_v0  ;;  %832 = vmatprep.mubr.msk.bf16.mxu1 (!%p287_p2), %vm929_vm0, %v928_v1  ;;  %v903_v8 = vld [vmem:[%s1112_s3 + $0x18] sm:$0xff] (!%p287_p2)   ;;  %v904_v9 = vld [vmem:[%s1112_s3 + $0x20] sm:$0xff] (!%p287_p2)   ;;  %v905_v10 = vld [vmem:[%s1112_s3 + $0x28] sm:$0xff] (!%p287_p2)  }
   0x8   : > { %830 = vmatprep.subr.bf16.mxu1 (!%p287_p2), %v928_v1  ;;  %864 = vmatprep.mubr.msk.bf16.mxu0 (!%p287_p2), %vm929_vm0, %v928_v1  ;;  %v906_v11 = vld [vmem:[%s1112_s3 + $0x30] sm:$0xff] (!%p287_p2)   ;;  %v907_v12 = vld [vmem:[%s1112_s3 + $0x38] sm:$0xff] (!%p287_p2)   ;;  %v908_v13 = vld [vmem:[%s1114_s5] sm:$0xff] (!%p287_p2)  }
   0x9   : > { %857 = vmatpush3.bf16.msra.mxu0 (!%p287_p2), %v908_v13  ;;  %v909_v14 = vld [vmem:[%s1114_s5 + $0x8] sm:$0xff] (!%p287_p2)   ;;  %v772_v15 = vld [vmem:[%s1111_s2] ss:$0 sm:$0xff] (!%p287_p2)  ;;  %v910_v23 = vld [vmem:[%s1114_s5 + $0x10] sm:$0xff] (!%p287_p2)  }
   0xa   : > { %858 = vmatprep.subr.bf16.mxu0 (!%p287_p2), %v928_v1  ;;  %v911_v24 = vld [vmem:[%s1114_s5 + $0x18] sm:$0xff] (!%p287_p2)   ;;  %v776_v25 = vld [vmem:[%s1113_s4] ss:$0 sm:$0xff] (!%p287_p2)  ;;  %v913_v34 = vld [vmem:[%s1116_s7 + $0x8] sm:$0xff] (!%p287_p2)  }
   0xb   : > { %831 = vmatpush3.bf16.msra.mxu1 (!%p287_p2), %v899_v2  ;;  %v912_v32 = vld [vmem:[%s1116_s7] sm:$0xff] (!%p287_p2)   ;;  %v914_v35 = vld [vmem:[%s1116_s7 + $0x10] sm:$0xff] (!%p287_p2)   ;;  %v915_v36 = vld [vmem:[%s1116_s7 + $0x18] sm:$0xff] (!%p287_p2)  }
   0xc   : > { %836 = vmatprep.subr.bf16.mxu1 (!%p287_p2), %v928_v1  ;;  %v916_v37 = vld [vmem:[%s1116_s7 + $0x20] sm:$0xff] (!%p287_p2)   ;;  %v917_v38 = vld [vmem:[%s1116_s7 + $0x28] sm:$0xff] (!%p287_p2)   ;;  %v918_v39 = vld [vmem:[%s1116_s7 + $0x30] sm:$0xff] (!%p287_p2)  }
   0xd   : > { %s1120_s10 = smov (!%p320_p3, %s765_s10), 1  ;;  %859 = vmatpush3.bf16.msra.mxu0 %v909_v14  ;;  %v919_v40 = vld [vmem:[%s1116_s7 + $0x38] sm:$0xff]   ;;  %v785_v41 = vld [vmem:[%s1115_s6] ss:$0 sm:$0xff] }
   0xe   : > { %s770_s15 = sshll.u32 %s1120_s10, 3  ;;  %860 = vmatprep.subr.bf16.mxu0 %v928_v1  ;;  %v791_v49 = vld [vmem:[%s1117_s8] ss:$0 sm:$0xff]  ;;  %s771_s29 = sshll.u32 %s1120_s10, 2 }
   0xf   : > { %s323_s18 = scalar_lea.vmem %s1109_s0, %s770_s15  ;;  %s327_s13 = scalar_lea.vmem %s1118_s9, %s771_s29 }
  0x10   : > { %v329_v3 = vld [vmem:[%s323_s18] sm:$0xff] }
  0x11   : > { %v330_v5 = vpack.c.bf16 %v329_v3, %v329_v3  ;;  %861 = vmatpush3.bf16.msra.mxu0 %v910_v23 }
  0x12   : > { %862 = vmatprep.subr.bf16.mxu0 %v928_v1 }
  0x13   : > { %833 = vmatmul.mubr.msk.bf16.vlgmr.msra.gmra.mrb[0].mxu1 %vm354_vm1, %v330_v5 }
  0x14   : > { %837 = vmatpush3.bf16.msra.mxu1 %v900_v4  ;;  %852 = vmatprep.mubr.msk.bf16.mxu1 %vm929_vm0, %v928_v1 }
  0x15   : > { %838 = vmatprep.subr.bf16.mxu1 %v928_v1  ;;  %863 = vmatpush3.bf16.msra.mxu0 %v911_v24 }
  0x16   : > { %868 = vmatprep.subr.bf16.mxu0 %v928_v1 }
  0x18   : > { %839 = vmatpush3.bf16.msra.mxu1 %v901_v6 }
  0x19   : > { %840 = vmatprep.subr.bf16.mxu1 %v928_v1 }
  0x1c   : > { %841 = vmatpush3.bf16.msra.mxu1 %v902_v7 }
  0x1d   : > { %842 = vmatprep.subr.bf16.mxu1 %v928_v1 }
  0x20   : > { %843 = vmatpush3.bf16.msra.mxu1 %v903_v8 }
  0x21   : > { %844 = vmatprep.subr.bf16.mxu1 %v928_v1 }
  0x24   : > { %845 = vmatpush3.bf16.msra.mxu1 %v904_v9 }
  0x25   : > { %846 = vmatprep.subr.bf16.mxu1 %v928_v1 }
  0x28   : > { %847 = vmatpush3.bf16.msra.mxu1 %v905_v10 }
  0x29   : > { %848 = vmatprep.subr.bf16.mxu1 %v928_v1 }
  0x2c   : > { %849 = vmatpush3.bf16.msra.mxu1 %v906_v11 }
  0x2d   : > { %850 = vmatprep.subr.bf16.mxu1 %v928_v1 }
  0x30   : > { %851 = vmatpush3.bf16.msra.mxu1 %v907_v12 }
  0xe6   : > { %v392_v16 = vpop.f32.mrb[0].mxu1 }
  0xe7   : > { %v393_v17 = vadd.f32 %v772_v15, %v392_v16  ;;  %v834_v18 = vpop.f32.mrb[1].mxu1 }
  0xe8   : > { %v395_v19 = vpop.f32.mrb[2].mxu1 }
  0xe9   : > { %v398_v20 = vmax.f32 %v393_v17, 0.0  ;;  %v835_v21 = vpop.f32.mrb[3].mxu1 }
  0xeb   : > { %v399_v22 = vpack.c.bf16 %v398_v20, %v398_v20 }
  0xed   : > { %853 = vmatmul.mubr.bf16.vlgmr.msra.gmra.mrb[4].mxu1 %v399_v22 }
 0x1c0   : > { %v505_v26 = vpop.f32.mrb[4].mxu1 }
 0x1c1   : > { %v506_v27 = vadd.f32 %v776_v25, %v505_v26  ;;  %v854_v28 = vpop.f32.mrb[5].mxu1 }
 0x1c2   : > { %v508_v29 = vpop.f32.mrb[6].mxu1 }
 0x1c3   : > { %v511_v30 = vmax.f32 %v506_v27, 0.0  ;;  %v855_v31 = vpop.f32.mrb[7].mxu1 }
 0x1c5   : > { %v512_v33 = vpack.c.bf16 %v511_v30, %v511_v30 }
 0x1c7   : > { %865 = vmatmul.mubr.msk.bf16.vlgmr.msra.gmra.mrb[0].mxu0 %vm552_vm2, %v512_v33 }
 0x1c8   : > { %869 = vmatpush3.bf16.msra.mxu0 %v912_v32  ;;  %884 = vmatprep.mubr.msk.bf16.mxu0 %vm929_vm0, %v928_v1 }
 0x1c9   : > { %870 = vmatprep.subr.bf16.mxu0 %v928_v1 }
 0x1cc   : > { %871 = vmatpush3.bf16.msra.mxu0 %v913_v34 }
 0x1cd   : > { %872 = vmatprep.subr.bf16.mxu0 %v928_v1 }
 0x1d0   : > { %873 = vmatpush3.bf16.msra.mxu0 %v914_v35 }
 0x1d1   : > { %874 = vmatprep.subr.bf16.mxu0 %v928_v1 }
 0x1d4   : > { %875 = vmatpush3.bf16.msra.mxu0 %v915_v36 }
 0x1d5   : > { %876 = vmatprep.subr.bf16.mxu0 %v928_v1 }
 0x1d8   : > { %877 = vmatpush3.bf16.msra.mxu0 %v916_v37 }
 0x1d9   : > { %878 = vmatprep.subr.bf16.mxu0 %v928_v1 }
 0x1dc   : > { %879 = vmatpush3.bf16.msra.mxu0 %v917_v38 }
 0x1dd   : > { %880 = vmatprep.subr.bf16.mxu0 %v928_v1 }
 0x1e0   : > { %881 = vmatpush3.bf16.msra.mxu0 %v918_v39 }
 0x1e1   : > { %882 = vmatprep.subr.bf16.mxu0 %v928_v1 }
 0x1e4   : > { %883 = vmatpush3.bf16.msra.mxu0 %v919_v40 }
 0x29a   : > { %v590_v42 = vpop.f32.mrb[0].mxu0 }
 0x29b   : > { %v591_v43 = vadd.f32 %v785_v41, %v590_v42  ;;  %v866_v44 = vpop.f32.mrb[1].mxu0 }
 0x29c   : > { %v593_v45 = vpop.f32.mrb[2].mxu0 }
 0x29d   : > { %v596_v46 = vmax.f32 %v591_v43, 0.0  ;;  %v867_v47 = vpop.f32.mrb[3].mxu0 }
 0x29f   : > { %v597_v48 = vpack.c.bf16 %v596_v46, %v596_v46 }
 0x2a1   : > { %885 = vmatmul.mubr.bf16.vlgmr.msra.gmra.mrb[4].mxu0 %v597_v48 }
 0x374   : > { %v703_v50 = vpop.f32.mrb[4].mxu0 }
 0x375   : > { %v704_v51 = vadd.f32 %v791_v49, %v703_v50  ;;  %v886_v52 = vpop.f32.mrb[5].mxu0 }
 0x376   : > { %v706_v53 = vpop.f32.mrb[6].mxu0 }
 0x377   : > { %v709_v54 = vpack.c.bf16 %v704_v51, %v704_v51  ;;  %v887_v55 = vpop.f32.mrb[7].mxu0 }
 0x379   : > { %711 = vst.msk [vmem:[%s327_s13] sm:$0xf] %vm710_vm3, %v709_v54 }
 0x37a PF: > { %s19_s30 = sadd.s32 1, %s926_s30  }
 0x37b   : > { %p16_p4 = scmp.ge.s32.totalorder %s19_s30, 4  }
 0x37d   :  { %18 = sbr.rel (!%p16_p4) target bundleno = 1 (0x1), region = 86 }

</bundles_post_ra>
